<compile_context>
chip_gen: v5e
topology: v5e:2x2
jax: 0.10.0
libtpu: 0.0.40
codegen_flags: <defaults>
</compile_context>

<pallas_src>
import math

import jax
import jax.numpy as jnp
from jax.experimental import pallas as pl
from jax.experimental.pallas import tpu as pltpu


_DEFAULT_SMALL_BYPASS_BYTES = 1 << 20   # <= 1 MiB: let XLA fuse it


def _vmem_capacity_bytes():
    """Queried physical per-TC VMEM capacity, with a conservative fallback."""
    try:
        cap = getattr(pltpu.get_tpu_info(), "vmem_capacity_bytes", None)
        if cap:
            return int(cap)
    except Exception:
        pass
    return 64 << 20  # assume the smallest per-TC VMEM (v7x) if the query fails


def _has_bf16_vector_units():
    """True on v6e / v7x (native bf16 VPU + EUP); False => mandatory f32 upcast."""
    try:
        kind = jax.devices()[0].device_kind.lower()
        return ("v6" in kind) or ("v7" in kind)
    except Exception:
        return False  # be conservative: upcast if the query fails


def _sublane_multiple(itemsize):
    """Native minimum sublane tile per packed dtype: f32 8, bf16 16, int8 32."""
    return {4: 8, 2: 16, 1: 32}.get(int(itemsize), 8)


def _make_kernel(func, compute_dtype):
    """Kernel: apply the wrapped shape-preserving func to the current tile."""
    def kernel(x_ref, o_ref):
        v = x_ref[...]
        if v.dtype != compute_dtype:
            v = v.astype(compute_dtype)
        o_ref[...] = func(v).astype(o_ref.dtype)
    return kernel


class Lambda:
    """Pallas port of the PyTorch Lambda module (no parameters)."""

    def __init__(self, func, *, row_block=None,
                 min_pallas_bytes=_DEFAULT_SMALL_BYPASS_BYTES):
        self.func = func                      # a JAX-traceable function of one array
        self._row_block = row_block           # optional leading-axis tile override
        self._min_pallas_bytes = min_pallas_bytes

    def __call__(self, x):
        x = jnp.asarray(x)
        out_aval = jax.eval_shape(self.func,
                                  jax.ShapeDtypeStruct(x.shape, x.dtype))

        if out_aval.shape != tuple(x.shape):
            # Shape-changing func (e.g. the tutorial's view lambdas): pure
            # metadata op in XLA -- no kernel, no extra HBM traffic.
            return self.func(x)

        total_bytes = int(x.size) * jnp.dtype(x.dtype).itemsize
        if x.ndim < 2 or total_bytes <= self._min_pallas_bytes:
            # Small-array / 1-D bypass: Pallas launch overhead dominates here,
            # and it keeps axis-0 funcs on 1-D inputs exactly correct.
            return self.func(x)

        # ---- shape-preserving func: run inside a Pallas kernel ------------
        nd = x.ndim
        n_rows = x.shape[0]
        row_elems = math.prod(x.shape[1:])
        in_item = jnp.dtype(x.dtype).itemsize
        out_item = jnp.dtype(out_aval.dtype).itemsize

        # f32 compute only where bf16 vector units are absent (v5e and older).
        upcast = (jnp.issubdtype(x.dtype, jnp.floating) and in_item < 4
                  and not _has_bf16_vector_units())
        compute_dtype = jnp.float32 if upcast else x.dtype
        comp_item = jnp.dtype(compute_dtype).itemsize

        cap = _vmem_capacity_bytes()
        vmem_limit = (cap * 3) // 4          # ~96 MiB on v5e/v6e, ~48 MiB on v7x
        budget = (vmem_limit * 3) // 4       # headroom for compiler internal scratch

        # Default 2-deep pipeline: 2 input + 2 output buffers, plus ~2 tiles of
        # compute-dtype intermediates (covers the mandatory f32 upcast on v5e).
        per_row = row_elems * (2 * in_item + 2 * out_item + 2 * comp_item)
        sublane = _sublane_multiple(in_item)

        lane_tiled = False
        if self._row_block is not None:
            tr = max(1, min(int(self._row_block), n_rows))
        elif budget // per_row >= n_rows:
            tr = n_rows                              # single full-extent block
        elif budget // per_row >= sublane:
            tr = (budget // per_row // sublane) * sublane
        elif nd == 2:
            lane_tiled = True                        # wide-row fallback below
            tr = sublane
        else:
            # TODO(synk): >2-D wide-row inputs would need a trailing-axis
            # fallback too; clamp to the minimum sublane tile for now.
            tr = sublane

        if not lane_tiled:
            block_shape = (tr,) + tuple(x.shape[1:])
            index_map = lambda i, _nd=nd: (i,) + (0,) * (_nd - 1)
            grid = (pl.cdiv(n_rows, tr),)
            dims = ("parallel",)
        else:
            # Lane-axis fallback (pointwise funcs): a single row does not fit
            # the per-buffer budget, so tile the trailing axis in 128s too.
            # TODO(synk): this path assumes a pointwise func; axis(-1)-dependent
            # shape-preserving funcs would need the full row.
            n_cols = x.shape[1]
            per_elem = 2 * in_item + 2 * out_item + 2 * comp_item
            max_elems = max(1, budget // per_elem)
            tc = max(128, (max_elems // (sublane * 128)) * 128)
            tc = min(tc, n_cols)
            block_shape = (tr, tc)
            index_map = lambda i, j: (i, j)
            grid = (pl.cdiv(n_rows, tr), pl.cdiv(n_cols, tc))
            dims = ("parallel", "parallel")

        if grid[0] > 1 and not lane_tiled:
            # Trace-time guard: if the func cannot even run on a partial
            # leading-axis block, fall back to plain XLA instead of failing.
            # (Funcs that silently mix rows are still the caller's contract.)
            try:
                blk_aval = jax.eval_shape(
                    self.func, jax.ShapeDtypeStruct(block_shape, compute_dtype))
                blk_ok = tuple(blk_aval.shape) == tuple(block_shape)
            except Exception:
                blk_ok = False
            if not blk_ok:
                return self.func(x)

        # Accurate cost estimate (no fake transcendentals for relu-style funcs).
        try:
            cost = pl.estimate_cost(
                self.func, jax.ShapeDtypeStruct(x.shape, compute_dtype))
        except Exception:
            cost = pl.CostEstimate(
                flops=int(x.size), transcendentals=0,
                bytes_accessed=int(x.size) * (in_item + out_item))

        out = pl.pallas_call(
            _make_kernel(self.func, compute_dtype),
            out_shape=jax.ShapeDtypeStruct(x.shape, out_aval.dtype),
            grid=grid,
            in_specs=[pl.BlockSpec(block_shape, index_map)],
            out_specs=pl.BlockSpec(block_shape, index_map),
            compiler_params=pltpu.CompilerParams(
                # Independent blocks -> shard across the two TensorCores on
                # v7x (neutral on single-TC v5e/v6e).
                dimension_semantics=dims,
                vmem_limit_bytes=int(vmem_limit),
            ),
            cost_estimate=cost,
        )(x)

        return out


if __name__ == "__main__":
    key = jax.random.PRNGKey(0)
    k1, k2, k3, k4, k5 = jax.random.split(key, 5)

    # --- tutorial usage 1: preprocess = lambda x: x.view(-1, 1, 28, 28) ---
    x1 = jax.random.normal(k1, (2, 784), dtype=jnp.float32)
    preprocess = Lambda(lambda x: x.reshape(-1, 1, 28, 28))
    y1 = jax.block_until_ready(preprocess(x1))
    assert y1.shape == (2, 1, 28, 28)
    assert jnp.allclose(y1, x1.reshape(-1, 1, 28, 28))

    # --- tutorial usage 2: lambda x: x.view(x.size(0), -1) ---
    x2 = jax.random.normal(k2, (2, 16, 4, 4), dtype=jnp.float32)
    flatten = Lambda(lambda x: x.reshape(x.shape[0], -1))
    y2 = jax.block_until_ready(flatten(x2))
    assert y2.shape == (2, 256)
    assert jnp.allclose(y2, x2.reshape(2, -1))

    # --- pointwise func forced through the Pallas kernel (small input) ---
    gelu_lambda = Lambda(lambda x: jax.nn.gelu(x) * 2.0, min_pallas_bytes=0)
    y3 = jax.block_until_ready(gelu_lambda(x1))
    assert y3.shape == x1.shape
    assert jnp.allclose(y3, jax.nn.gelu(x1) * 2.0, atol=1e-5)

    # --- axis-dependent shape-preserving func (kernel sees original shape) ---
    softmax_lambda = Lambda(lambda x: jax.nn.softmax(x, axis=-1),
                            min_pallas_bytes=0)
    y4 = jax.block_until_ready(softmax_lambda(x2))
    assert jnp.allclose(y4, jax.nn.softmax(x2, axis=-1), atol=1e-6)

    # --- multi-block row-tiled grid path (forced small row tile) ---
    x5 = jax.random.normal(k3, (48, 256), dtype=jnp.float32)
    tiled_relu = Lambda(lambda x: jnp.maximum(x, 0.0) + 1.0,
                        row_block=16, min_pallas_bytes=0)
    y5 = jax.block_until_ready(tiled_relu(x5))
    assert jnp.allclose(y5, jnp.maximum(x5, 0.0) + 1.0)

    # --- bf16 input: native bf16 compute on v6e/v7x, f32 upcast on v5e ---
    x6 = jax.random.normal(k4, (16, 256), dtype=jnp.float32).astype(jnp.bfloat16)
    bf16_gelu = Lambda(lambda x: jax.nn.gelu(x), min_pallas_bytes=0)
    y6 = jax.block_until_ready(bf16_gelu(x6))
    ref6 = jax.nn.gelu(x6.astype(jnp.float32)).astype(jnp.bfloat16)
    assert jnp.allclose(y6.astype(jnp.float32), ref6.astype(jnp.float32), atol=2e-2)

    # --- input above the small-array bypass: natural Pallas path ---
    x7 = jax.random.normal(k5, (512, 1024), dtype=jnp.float32)  # 2 MiB
    scale_lambda = Lambda(lambda x: x * 0.5 + 1.0)
    y7 = jax.block_until_ready(scale_lambda(x7))
    assert jnp.allclose(y7, x7 * 0.5 + 1.0)

    print("KERNEL_OK")
</pallas_src>

<mosaic_0001>
module attributes {stable_mosaic.version = 11 : i64} {
  func.func @kernel(%arg0: i32, %arg1: memref<2x784xf32, #tpu.memory_space<vmem>>, %arg2: memref<2x784xf32, #tpu.memory_space<vmem>>) attributes {dimension_semantics = [#tpu.dimension_semantics<parallel>], iteration_bounds = array<i64: 1>, scalar_prefetch = 0 : i64, scratch_operands = 0 : i64, tpu.core_type = #tpu.core_type<tc>, window_params = [{transform_indices = @transform_0, window_bounds = array<i64: 2, 784>}, {transform_indices = @transform_1, window_bounds = array<i64: 2, 784>}]} {
    %c0 = arith.constant 0 : index
    %c0_0 = arith.constant 0 : index
    %0 = vector.load %arg1[%c0, %c0_0] : memref<2x784xf32, #tpu.memory_space<vmem>>, vector<2x784xf32>
    %1 = arith.mulf %0, %0 : vector<2x784xf32>
    %2 = arith.mulf %0, %1 : vector<2x784xf32>
    %cst = arith.constant 4.471500e-02 : f32
    %3 = vector.broadcast %cst : f32 to vector<2x784xf32>
    %4 = arith.mulf %3, %2 : vector<2x784xf32>
    %5 = arith.addf %0, %4 : vector<2x784xf32>
    %cst_1 = arith.constant 0.797884583 : f32
    %6 = vector.broadcast %cst_1 : f32 to vector<2x784xf32>
    %7 = arith.mulf %6, %5 : vector<2x784xf32>
    %8 = math.tanh %7 : vector<2x784xf32>
    %cst_2 = arith.constant 1.000000e+00 : f32
    %9 = vector.broadcast %cst_2 : f32 to vector<2x784xf32>
    %10 = arith.addf %9, %8 : vector<2x784xf32>
    %cst_3 = arith.constant 5.000000e-01 : f32
    %11 = vector.broadcast %cst_3 : f32 to vector<2x784xf32>
    %12 = arith.mulf %11, %10 : vector<2x784xf32>
    %13 = arith.mulf %0, %12 : vector<2x784xf32>
    %cst_4 = arith.constant 2.000000e+00 : f32
    %14 = vector.broadcast %cst_4 : f32 to vector<2x784xf32>
    %15 = arith.mulf %13, %14 : vector<2x784xf32>
    %c0_5 = arith.constant 0 : index
    %c0_6 = arith.constant 0 : index
    %16 = vector.load %arg2[%c0_5, %c0_6] : memref<2x784xf32, #tpu.memory_space<vmem>>, vector<2x784xf32>
    tpu.vector_store %arg2[%c0_5, %c0_6], %15 {strides = array<i32>} : memref<2x784xf32, #tpu.memory_space<vmem>>, vector<2x784xf32>,
    return
  }
  func.func @transform_0(%arg0: i32) -> (i32, i32) {
    %c0_i32 = arith.constant 0 : i32
    %c0_i32_0 = arith.constant 0 : i32
    return %arg0, %c0_i32 : i32, i32
  }
  func.func @transform_1(%arg0: i32) -> (i32, i32) {
    %c0_i32 = arith.constant 0 : i32
    %c0_i32_0 = arith.constant 0 : i32
    return %arg0, %c0_i32 : i32, i32
  }
}

</mosaic_0001>

<bundles_post_ra>
// kernel: tpu_custom_call.1
= control target key start
LH: loop header
LB: loop body
LE: loop exit
PB: predicated region body
PF: predicated region fallthrough
CT: control target
= control target key end

     0   :  { %6 = vsyncpa [#allocation3], 0  ;;  %s145_s0 = inlined_call_operand.hbm [shape: f32[2,784], index: 0, kind: input, shape index: {}]   ;;  %s146_s1 = inlined_call_operand.hbm [shape: f32[2,784], index: 1, kind: output, shape index: {}]  }
   0x1   :  { %7 = vsyncpa [#allocation4], 0  ;;  %s13_s8 = sshll.u32 %s145_s0, 4  ;;  %s127_s9 = smov [#allocation2]   ;;  %s14_s8 = int_to_ptr.hbm [resolvable:$true] %s13_s8 }
   0x2   :  { %s15_s10 = sshll.u32 %s127_s9, 4  ;;  %s16_s10 = int_to_ptr.vmem [resolvable:$true] %s15_s10 }
   0x3   :  { %18 = dma.hbm_to_vmem [thread:$0]  %s14_s8, 224, %s16_s10, [#allocation3]  }
   0x4   :  { %123 = dma.done.wait [#allocation3], 224  }
   0x5   :  { %124 = vsyncadd [#allocation3], 4294967072  ;;  %v23_v0 = vld [vmem:[#allocation2] sm:$0xff]  ;;  %v24_v1 = vld [vmem:[#allocation2 + $0x8] sm:$0x3f]  ;;  %vm46_vm0 = vcmask 1041408  }
   0x6   :  { %v25_v2 = vmul.f32 %v23_v0, %v23_v0  ;;  %v26_v3 = vmul.f32 %v24_v1, %v24_v1  ;;  %vm47_vm1 = vcmask 1043458   ;;  %vm49_vm3 = vcmask 128004   ;;  %s128_s0 = smov [#allocation5]   ;;  %s59_s14 = sshll.u32 %s146_s1, 4  ;;  %s60_s14 = int_to_ptr.hbm [resolvable:$true] %s59_s14 }
   0x7   :  { %vm48_vm2 = vmor %vm47_vm1, %vm46_vm0  ;;  %s57_s11 = sshll.u32 %s128_s0, 4  ;;  %s58_s11 = int_to_ptr.vmem [resolvable:$true] %s57_s11 }
   0x8   :  { %v27_v4 = vmul.f32 %v25_v2, %v23_v0  ;;  %v28_v5 = vmul.f32 %v26_v3, %v24_v1  ;;  %vm50_vm4 = vmor %vm49_vm3, %vm48_vm2 }
   0xa   :  { %v29_v6 = vmul.f32 0.044715, %v27_v4  ;;  %v30_v7 = vmul.f32 0.044715, %v28_v5 }
   0xc   :  { %v31_v8 = vadd.f32 %v29_v6, %v23_v0  ;;  %v32_v9 = vadd.f32 %v30_v7, %v24_v1 }
   0xe   :  { %v33_v10 = vmul.f32 0.7978846, %v31_v8  ;;  %v34_v11 = vmul.f32 0.7978846, %v32_v9 }
  0x10   :  { %71 = vtanh.f32 %v33_v10 }
  0x11   :  { %73 = vtanh.f32 %v34_v11 }
  0x16   :  { %v72_v12 = vpop.eup %71 }
  0x17   :  { %v74_v13 = vpop.eup %73  ;;  %v37_v14 = vadd.f32 1.0, %v72_v12 }
  0x18   :  { %v38_v15 = vadd.f32 1.0, %v74_v13 }
  0x19   :  { %v39_v16 = vmul.f32 0.5, %v37_v14 }
  0x1a   :  { %v40_v17 = vmul.f32 0.5, %v38_v15 }
  0x1b   :  { %v41_v18 = vmul.f32 %v39_v16, %v23_v0 }
  0x1c   :  { %v42_v19 = vmul.f32 %v40_v17, %v24_v1 }
  0x1d   :  { %v43_v20 = vmul.f32 2.0, %v41_v18 }
  0x1e   :  { %v44_v21 = vmul.f32 2.0, %v42_v19 }
  0x1f   :  { %45 = vst [vmem:[#allocation5] sm:$0xff] %v43_v20 }
  0x20   :  { %51 = vst.msk [vmem:[#allocation5 + $0x8] sm:$0x3f] %vm50_vm4, %v44_v21 }
  0x21   :  { %62 = dma.vmem_to_hbm [thread:$0]  %s58_s11, 224, %s60_s14, [#allocation4]  }
  0x22   :  { %125 = dma.done.wait [#allocation4], 224  }
  0x23   :  { %126 = vsyncadd [#allocation4], 4294967072 }
  0x24   :  { %67 = vsyncpa [#allocation3], 1 }
  0x25   :  { %68 = vsyncpa [#allocation4], 1 }

</bundles_post_ra>
